<compile_context>
chip_gen: v5e
topology: v5e:2x2
jax: 0.10.0
libtpu: 0.0.40
codegen_flags: <defaults>
</compile_context>

<pallas_src>
import functools
import math

import jax
import jax.numpy as jnp
from jax import lax
from jax.experimental import pallas as pl
from jax.experimental.pallas import tpu as pltpu


def mha_kernel(q_ref, k_ref, v_ref, mask_ref, w_ref, b_ref, out_ref, ctx_ref,
               *, num_heads, d_k):
    """Per-batch fused multi-head attention.

    q_ref:    [Sq, D]      k_ref/v_ref: [Sk, D]
    mask_ref: [Sq, Sk] int32 (1 = attend, 0 = masked)
    w_ref:    [4, D, D]    packed (Wq, Wk, Wv, Wo), stored as [in, out]
    b_ref:    [4, D]       packed (bq, bk, bv, bo)
    out_ref:  [Sq, D]
    ctx_ref:  VMEM scratch [Sq, D] f32 (concatenated head outputs)
    """
    scale = 1.0 / math.sqrt(d_k)

    # Input projections: [S, D] x [D, D] MXU matmuls, f32 accumulation.
    xq = jnp.dot(q_ref[...], w_ref[0],
                 preferred_element_type=jnp.float32) + b_ref[0:1, :]
    xk = jnp.dot(k_ref[...], w_ref[1],
                 preferred_element_type=jnp.float32) + b_ref[1:2, :]
    xv = jnp.dot(v_ref[...], w_ref[2],
                 preferred_element_type=jnp.float32) + b_ref[2:3, :]

    # Fold the softmax scale into the queries once (cheaper than scaling every
    # per-head [Sq, Sk] score matrix).
    xq = xq * jnp.float32(scale)

    # Additive mask bias shared by all heads: 0 where attended, -1e9 where
    # masked (matches masked_fill(mask == 0, -1e9)).
    mask_bias = jnp.where(mask_ref[...] == 0,
                          jnp.float32(-1e9), jnp.float32(0.0))  # [Sq, Sk]

    # Per-head scaled dot-product attention (statically unrolled over heads).
    for h in range(num_heads):
        sl = slice(h * d_k, (h + 1) * d_k)
        qh = xq[:, sl]                       # [Sq, d_k] (already scaled)
        kh = xk[:, sl]                       # [Sk, d_k]
        vh = xv[:, sl]                       # [Sk, d_k]

        s = jnp.einsum('qd,kd->qk', qh, kh,
                       preferred_element_type=jnp.float32) + mask_bias  # [Sq, Sk]

        m = jnp.max(s, axis=-1, keepdims=True)
        p = jnp.exp(s - m)
        p = p / jnp.sum(p, axis=-1, keepdims=True)

        ctx_ref[:, sl] = jnp.dot(p, vh, preferred_element_type=jnp.float32)

    # Output projection over the concatenated heads (single MXU matmul).
    out = jnp.dot(ctx_ref[...], w_ref[3],
                  preferred_element_type=jnp.float32) + b_ref[3:4, :]
    out_ref[...] = out.astype(out_ref.dtype)


def multi_headed_attention(query, key, value, params, mask=None, *, num_heads):
    """query: [B, Sq, D]; key/value: [B, Sk, D]; mask: [B, Sq, Sk] or None."""
    B, Sq, D = query.shape
    Sk = key.shape[1]
    assert D % num_heads == 0
    d_k = D // num_heads

    # Pack parameters: one DMA for all weights, one for all biases.
    w = jnp.stack([params["wq"], params["wk"], params["wv"], params["wo"]])  # [4, D, D]
    b = jnp.stack([params["bq"], params["bk"], params["bv"], params["bo"]])  # [4, D]

    if mask is None:
        mask = jnp.ones((B, Sq, Sk), dtype=jnp.int32)
    else:
        mask = jnp.broadcast_to(mask, (B, Sq, Sk)).astype(jnp.int32)

    kernel = functools.partial(mha_kernel, num_heads=num_heads, d_k=d_k)

    per_batch = lambda bi: (bi, 0, 0)   # tiled along batch
    const3 = lambda bi: (0, 0, 0)       # replicated weights (fetched once)
    const2 = lambda bi: (0, 0)          # replicated biases

    out = pl.pallas_call(
        kernel,
        out_shape=jax.ShapeDtypeStruct((B, Sq, D), query.dtype),
        grid_spec=pltpu.PrefetchScalarGridSpec(
            num_scalar_prefetch=0,
            grid=(B,),
            in_specs=[
                pl.BlockSpec((None, Sq, D), per_batch),   # query
                pl.BlockSpec((None, Sk, D), per_batch),   # key
                pl.BlockSpec((None, Sk, D), per_batch),   # value
                pl.BlockSpec((None, Sq, Sk), per_batch),  # mask
                pl.BlockSpec((4, D, D), const3),          # packed weights
                pl.BlockSpec((4, D), const2),             # packed biases
            ],
            out_specs=pl.BlockSpec((None, Sq, D), per_batch),
            scratch_shapes=[pltpu.VMEM((Sq, D), jnp.float32)],
        ),
        compiler_params=pltpu.CompilerParams(
            dimension_semantics=("parallel",),
        ),
    )(query, key, value, mask, w, b)

    return out


def _reference(query, key, value, params, mask, num_heads):
    """Pure-JAX reference mirroring the PyTorch module (eval mode)."""
    B, Sq, D = query.shape
    Sk = key.shape[1]
    d_k = D // num_heads
    P = lax.Precision.HIGHEST

    xq = jnp.matmul(query, params["wq"], precision=P) + params["bq"]
    xk = jnp.matmul(key, params["wk"], precision=P) + params["bk"]
    xv = jnp.matmul(value, params["wv"], precision=P) + params["bv"]

    def split(x, S):
        return x.reshape(B, S, num_heads, d_k).transpose(0, 2, 1, 3)

    qh, kh, vh = split(xq, Sq), split(xk, Sk), split(xv, Sk)
    scores = jnp.einsum('bhqd,bhkd->bhqk', qh, kh, precision=P) / math.sqrt(d_k)
    if mask is not None:
        scores = jnp.where(mask[:, None, :, :] == 0, -1e9, scores)
    p = jax.nn.softmax(scores, axis=-1)
    ctx = jnp.einsum('bhqk,bhkd->bhqd', p, vh, precision=P)
    ctx = ctx.transpose(0, 2, 1, 3).reshape(B, Sq, D)
    return jnp.matmul(ctx, params["wo"], precision=P) + params["bo"]


if __name__ == "__main__":
    # Small shapes consistent with the module: h=4 heads, d_model=32, seq=8.
    B, S, D, H = 2, 8, 32, 4

    root = jax.random.PRNGKey(0)
    ks = jax.random.split(root, 11)
    query = jax.random.normal(ks[0], (B, S, D), jnp.float32)
    key_in = jax.random.normal(ks[1], (B, S, D), jnp.float32)
    value = jax.random.normal(ks[2], (B, S, D), jnp.float32)

    params = {
        # nn.Linear weights stored pre-transposed as [in, out] so the kernel
        # computes x @ W + b (PyTorch stores W as [out, in] and does x @ W.T).
        "wq": jax.random.normal(ks[3], (D, D), jnp.float32) * 0.1,
        "wk": jax.random.normal(ks[4], (D, D), jnp.float32) * 0.1,
        "wv": jax.random.normal(ks[5], (D, D), jnp.float32) * 0.1,
        "wo": jax.random.normal(ks[6], (D, D), jnp.float32) * 0.1,
        "bq": jax.random.normal(ks[7], (D,), jnp.float32) * 0.1,
        "bk": jax.random.normal(ks[8], (D,), jnp.float32) * 0.1,
        "bv": jax.random.normal(ks[9], (D,), jnp.float32) * 0.1,
        "bo": jax.random.normal(ks[10], (D,), jnp.float32) * 0.1,
    }

    # Padding mask: batch 0 attends to all 8 keys, batch 1 only to the first 6.
    valid = jnp.array([8, 6])
    key_pos = jnp.arange(S)[None, None, :]                      # [1, 1, S]
    mask = (key_pos < valid[:, None, None]).astype(jnp.int32)   # [B, 1, S]
    mask = jnp.broadcast_to(mask, (B, S, S))                    # [B, Sq, Sk]

    out = multi_headed_attention(query, key_in, value, params, mask, num_heads=H)
    out = jax.block_until_ready(out)

    ref = _reference(query, key_in, value, params, mask, H)
    assert out.shape == (B, S, D)
    err = jnp.max(jnp.abs(out - ref))
    assert jnp.allclose(out, ref, atol=1e-4, rtol=1e-4), f"max abs err {err}"

    print("KERNEL_OK")
</pallas_src>

<mosaic_0001>
module attributes {stable_mosaic.version = 11 : i64} {
  func.func @mha_kernel(%arg0: i32, %arg1: memref<1x8x32xf32, #tpu.memory_space<vmem>>, %arg2: memref<1x8x32xf32, #tpu.memory_space<vmem>>, %arg3: memref<1x8x32xf32, #tpu.memory_space<vmem>>, %arg4: memref<1x8x8xi32, #tpu.memory_space<vmem>>, %arg5: memref<4x32x32xf32, #tpu.memory_space<vmem>>, %arg6: memref<4x32xf32, #tpu.memory_space<vmem>>, %arg7: memref<1x8x32xf32, #tpu.memory_space<vmem>>, %arg8: memref<8x32xf32, #tpu.memory_space<vmem>>) attributes {dimension_semantics = [#tpu.dimension_semantics<parallel>], iteration_bounds = array<i64: 2>, scalar_prefetch = 0 : i64, scratch_operands = 1 : i64, tpu.core_type = #tpu.core_type<tc>, window_params = [{transform_indices = @transform_0, window_bounds = array<i64: 1, 8, 32>}, {transform_indices = @transform_1, window_bounds = array<i64: 1, 8, 32>}, {transform_indices = @transform_2, window_bounds = array<i64: 1, 8, 32>}, {transform_indices = @transform_3, window_bounds = array<i64: 1, 8, 8>}, {pipeline_mode = #tpu.pipeline_mode<synchronous>, transform_indices = @transform_4, window_bounds = array<i64: 4, 32, 32>}, {pipeline_mode = #tpu.pipeline_mode<synchronous>, transform_indices = @transform_5, window_bounds = array<i64: 4, 32>}, {transform_indices = @transform_6, window_bounds = array<i64: 1, 8, 32>}]} {
    %c0 = arith.constant 0 : index
    %c0_0 = arith.constant 0 : index
    %c0_1 = arith.constant 0 : index
    %0 = vector.load %arg1[%c0, %c0_0, %c0_1] : memref<1x8x32xf32, #tpu.memory_space<vmem>>, vector<1x8x32xf32>
    %1 = vector.shape_cast %0 : vector<1x8x32xf32> to vector<8x32xf32>
    %c0_2 = arith.constant 0 : index
    %c0_3 = arith.constant 0 : index
    %c0_4 = arith.constant 0 : index
    %2 = vector.load %arg5[%c0_2, %c0_3, %c0_4] : memref<4x32x32xf32, #tpu.memory_space<vmem>>, vector<1x32x32xf32>
    %3 = vector.shape_cast %2 : vector<1x32x32xf32> to vector<32x32xf32>
    %cst = arith.constant dense<0.000000e+00> : vector<8x32xf32>
    %4 = tpu.matmul %1, %3, %cst {dimension_numbers = #tpu.dot_dimension_numbers<[1], [0], [0], [1], [0, 0, 1, 1], [], []>} : vector<8x32xf32>, vector<32x32xf32>, vector<8x32xf32> -> vector<8x32xf32>
    %c0_5 = arith.constant 0 : index
    %c0_6 = arith.constant 0 : index
    %5 = vector.load %arg6[%c0_5, %c0_6] : memref<4x32xf32, #tpu.memory_space<vmem>>, vector<1x32xf32>
    %6 = vector.broadcast %5 : vector<1x32xf32> to vector<8x32xf32>
    %7 = arith.addf %4, %6 : vector<8x32xf32>
    %c0_7 = arith.constant 0 : index
    %c0_8 = arith.constant 0 : index
    %c0_9 = arith.constant 0 : index
    %8 = vector.load %arg2[%c0_7, %c0_8, %c0_9] : memref<1x8x32xf32, #tpu.memory_space<vmem>>, vector<1x8x32xf32>
    %9 = vector.shape_cast %8 : vector<1x8x32xf32> to vector<8x32xf32>
    %c1 = arith.constant 1 : index
    %c0_10 = arith.constant 0 : index
    %c0_11 = arith.constant 0 : index
    %10 = vector.load %arg5[%c1, %c0_10, %c0_11] : memref<4x32x32xf32, #tpu.memory_space<vmem>>, vector<1x32x32xf32>
    %11 = vector.shape_cast %10 : vector<1x32x32xf32> to vector<32x32xf32>
    %cst_12 = arith.constant dense<0.000000e+00> : vector<8x32xf32>
    %12 = tpu.matmul %9, %11, %cst_12 {dimension_numbers = #tpu.dot_dimension_numbers<[1], [0], [0], [1], [0, 0, 1, 1], [], []>} : vector<8x32xf32>, vector<32x32xf32>, vector<8x32xf32> -> vector<8x32xf32>
    %c1_13 = arith.constant 1 : index
    %c0_14 = arith.constant 0 : index
    %13 = vector.load %arg6[%c1_13, %c0_14] : memref<4x32xf32, #tpu.memory_space<vmem>>, vector<1x32xf32>
    %14 = vector.broadcast %13 : vector<1x32xf32> to vector<8x32xf32>
    %15 = arith.addf %12, %14 : vector<8x32xf32>
    %c0_15 = arith.constant 0 : index
    %c0_16 = arith.constant 0 : index
    %c0_17 = arith.constant 0 : index
    %16 = vector.load %arg3[%c0_15, %c0_16, %c0_17] : memref<1x8x32xf32, #tpu.memory_space<vmem>>, vector<1x8x32xf32>
    %17 = vector.shape_cast %16 : vector<1x8x32xf32> to vector<8x32xf32>
    %c2 = arith.constant 2 : index
    %c0_18 = arith.constant 0 : index
    %c0_19 = arith.constant 0 : index
    %18 = vector.load %arg5[%c2, %c0_18, %c0_19] : memref<4x32x32xf32, #tpu.memory_space<vmem>>, vector<1x32x32xf32>
    %19 = vector.shape_cast %18 : vector<1x32x32xf32> to vector<32x32xf32>
    %cst_20 = arith.constant dense<0.000000e+00> : vector<8x32xf32>
    %20 = tpu.matmul %17, %19, %cst_20 {dimension_numbers = #tpu.dot_dimension_numbers<[1], [0], [0], [1], [0, 0, 1, 1], [], []>} : vector<8x32xf32>, vector<32x32xf32>, vector<8x32xf32> -> vector<8x32xf32>
    %c2_21 = arith.constant 2 : index
    %c0_22 = arith.constant 0 : index
    %21 = vector.load %arg6[%c2_21, %c0_22] : memref<4x32xf32, #tpu.memory_space<vmem>>, vector<1x32xf32>
    %22 = vector.broadcast %21 : vector<1x32xf32> to vector<8x32xf32>
    %23 = arith.addf %20, %22 : vector<8x32xf32>
    %cst_23 = arith.constant 0.353553385 : f32
    %24 = vector.broadcast %cst_23 : f32 to vector<8x32xf32>
    %25 = arith.mulf %7, %24 : vector<8x32xf32>
    %c0_24 = arith.constant 0 : index
    %c0_25 = arith.constant 0 : index
    %c0_26 = arith.constant 0 : index
    %26 = vector.load %arg4[%c0_24, %c0_25, %c0_26] : memref<1x8x8xi32, #tpu.memory_space<vmem>>, vector<1x8x8xi32>
    %27 = vector.shape_cast %26 : vector<1x8x8xi32> to vector<8x8xi32>
    %c0_i32 = arith.constant 0 : i32
    %28 = vector.broadcast %c0_i32 : i32 to vector<8x8xi32>
    %29 = arith.cmpi eq, %27, %28 : vector<8x8xi32>
    %cst_27 = arith.constant -1.000000e+09 : f32
    %cst_28 = arith.constant 0.000000e+00 : f32
    %30 = vector.broadcast %cst_27 : f32 to vector<8x8xf32>
    %31 = vector.broadcast %cst_28 : f32 to vector<8x8xf32>
    %32 = arith.select %29, %30, %31 : vector<8x8xi1>, vector<8x8xf32>
    %33 = vector.extract_strided_slice %25 {offsets = [0, 0], sizes = [8, 8], strides = [1, 1]} : vector<8x32xf32> to vector<8x8xf32>
    %34 = vector.extract_strided_slice %15 {offsets = [0, 0], sizes = [8, 8], strides = [1, 1]} : vector<8x32xf32> to vector<8x8xf32>
    %35 = vector.extract_strided_slice %23 {offsets = [0, 0], sizes = [8, 8], strides = [1, 1]} : vector<8x32xf32> to vector<8x8xf32>
    "tpu.trace_start"() <{level = 10 : i32, message = "qd,kd->qk"}> : () -> ()
    %cst_29 = arith.constant dense<0.000000e+00> : vector<8x8xf32>
    %36 = tpu.matmul %33, %34, %cst_29 {dimension_numbers = #tpu.dot_dimension_numbers<[1], [1], [0], [0], [0, 0, 1, 0], [], []>} : vector<8x8xf32>, vector<8x8xf32>, vector<8x8xf32> -> vector<8x8xf32>
    "tpu.trace_stop"() : () -> ()
    %37 = arith.addf %36, %32 : vector<8x8xf32>
    %cst_30 = arith.constant dense<0xFF800000> : vector<8xf32>
    %38 = vector.multi_reduction <maximumf>, %37, %cst_30 [1] : vector<8x8xf32> to vector<8xf32>
    %39 = vector.shape_cast %38 : vector<8xf32> to vector<8x1xf32>
    %40 = vector.broadcast %39 : vector<8x1xf32> to vector<8x8xf32>
    %41 = arith.subf %37, %40 : vector<8x8xf32>
    %42 = math.exp %41 : vector<8x8xf32>
    %cst_31 = arith.constant dense<0.000000e+00> : vector<8xf32>
    %43 = vector.multi_reduction <add>, %42, %cst_31 [1] : vector<8x8xf32> to vector<8xf32>
    %44 = vector.shape_cast %43 : vector<8xf32> to vector<8x1xf32>
    %45 = vector.broadcast %44 : vector<8x1xf32> to vector<8x8xf32>
    %46 = arith.divf %42, %45 : vector<8x8xf32>
    %cst_32 = arith.constant dense<0.000000e+00> : vector<8x8xf32>
    %47 = tpu.matmul %46, %35, %cst_32 {dimension_numbers = #tpu.dot_dimension_numbers<[1], [0], [0], [1], [0, 0, 1, 1], [], []>} : vector<8x8xf32>, vector<8x8xf32>, vector<8x8xf32> -> vector<8x8xf32>
    %c0_33 = arith.constant 0 : index
    %c0_34 = arith.constant 0 : index
    %48 = vector.load %arg8[%c0_33, %c0_34] : memref<8x32xf32, #tpu.memory_space<vmem>>, vector<8x8xf32>
    tpu.vector_store %arg8[%c0_33, %c0_34], %47 {strides = array<i32>} : memref<8x32xf32, #tpu.memory_space<vmem>>, vector<8x8xf32>,
    %49 = vector.extract_strided_slice %25 {offsets = [0, 8], sizes = [8, 8], strides = [1, 1]} : vector<8x32xf32> to vector<8x8xf32>
    %50 = vector.extract_strided_slice %15 {offsets = [0, 8], sizes = [8, 8], strides = [1, 1]} : vector<8x32xf32> to vector<8x8xf32>
    %51 = vector.extract_strided_slice %23 {offsets = [0, 8], sizes = [8, 8], strides = [1, 1]} : vector<8x32xf32> to vector<8x8xf32>
    "tpu.trace_start"() <{level = 10 : i32, message = "qd,kd->qk"}> : () -> ()
    %cst_35 = arith.constant dense<0.000000e+00> : vector<8x8xf32>
    %52 = tpu.matmul %49, %50, %cst_35 {dimension_numbers = #tpu.dot_dimension_numbers<[1], [1], [0], [0], [0, 0, 1, 0], [], []>} : vector<8x8xf32>, vector<8x8xf32>, vector<8x8xf32> -> vector<8x8xf32>
    "tpu.trace_stop"() : () -> ()
    %53 = arith.addf %52, %32 : vector<8x8xf32>
    %cst_36 = arith.constant dense<0xFF800000> : vector<8xf32>
    %54 = vector.multi_reduction <maximumf>, %53, %cst_36 [1] : vector<8x8xf32> to vector<8xf32>
    %55 = vector.shape_cast %54 : vector<8xf32> to vector<8x1xf32>
    %56 = vector.broadcast %55 : vector<8x1xf32> to vector<8x8xf32>
    %57 = arith.subf %53, %56 : vector<8x8xf32>
    %58 = math.exp %57 : vector<8x8xf32>
    %cst_37 = arith.constant dense<0.000000e+00> : vector<8xf32>
    %59 = vector.multi_reduction <add>, %58, %cst_37 [1] : vector<8x8xf32> to vector<8xf32>
    %60 = vector.shape_cast %59 : vector<8xf32> to vector<8x1xf32>
    %61 = vector.broadcast %60 : vector<8x1xf32> to vector<8x8xf32>
    %62 = arith.divf %58, %61 : vector<8x8xf32>
    %cst_38 = arith.constant dense<0.000000e+00> : vector<8x8xf32>
    %63 = tpu.matmul %62, %51, %cst_38 {dimension_numbers = #tpu.dot_dimension_numbers<[1], [0], [0], [1], [0, 0, 1, 1], [], []>} : vector<8x8xf32>, vector<8x8xf32>, vector<8x8xf32> -> vector<8x8xf32>
    %c0_39 = arith.constant 0 : index
    %c8 = arith.constant 8 : index
    %64 = vector.load %arg8[%c0_39, %c8] : memref<8x32xf32, #tpu.memory_space<vmem>>, vector<8x8xf32>
    tpu.vector_store %arg8[%c0_39, %c8], %63 {strides = array<i32>} : memref<8x32xf32, #tpu.memory_space<vmem>>, vector<8x8xf32>,
    %65 = vector.extract_strided_slice %25 {offsets = [0, 16], sizes = [8, 8], strides = [1, 1]} : vector<8x32xf32> to vector<8x8xf32>
    %66 = vector.extract_strided_slice %15 {offsets = [0, 16], sizes = [8, 8], strides = [1, 1]} : vector<8x32xf32> to vector<8x8xf32>
    %67 = vector.extract_strided_slice %23 {offsets = [0, 16], sizes = [8, 8], strides = [1, 1]} : vector<8x32xf32> to vector<8x8xf32>
    "tpu.trace_start"() <{level = 10 : i32, message = "qd,kd->qk"}> : () -> ()
    %cst_40 = arith.constant dense<0.000000e+00> : vector<8x8xf32>
    %68 = tpu.matmul %65, %66, %cst_40 {dimension_numbers = #tpu.dot_dimension_numbers<[1], [1], [0], [0], [0, 0, 1, 0], [], []>} : vector<8x8xf32>, vector<8x8xf32>, vector<8x8xf32> -> vector<8x8xf32>
    "tpu.trace_stop"() : () -> ()
    %69 = arith.addf %68, %32 : vector<8x8xf32>
    %cst_41 = arith.constant dense<0xFF800000> : vector<8xf32>
    %70 = vector.multi_reduction <maximumf>, %69, %cst_41 [1] : vector<8x8xf32> to vector<8xf32>
    %71 = vector.shape_cast %70 : vector<8xf32> to vector<8x1xf32>
    %72 = vector.broadcast %71 : vector<8x1xf32> to vector<8x8xf32>
    %73 = arith.subf %69, %72 : vector<8x8xf32>
    %74 = math.exp %73 : vector<8x8xf32>
    %cst_42 = arith.constant dense<0.000000e+00> : vector<8xf32>
    %75 = vector.multi_reduction <add>, %74, %cst_42 [1] : vector<8x8xf32> to vector<8xf32>
    %76 = vector.shape_cast %75 : vector<8xf32> to vector<8x1xf32>
    %77 = vector.broadcast %76 : vector<8x1xf32> to vector<8x8xf32>
    %78 = arith.divf %74, %77 : vector<8x8xf32>
    %cst_43 = arith.constant dense<0.000000e+00> : vector<8x8xf32>
    %79 = tpu.matmul %78, %67, %cst_43 {dimension_numbers = #tpu.dot_dimension_numbers<[1], [0], [0], [1], [0, 0, 1, 1], [], []>} : vector<8x8xf32>, vector<8x8xf32>, vector<8x8xf32> -> vector<8x8xf32>
    %c0_44 = arith.constant 0 : index
    %c16 = arith.constant 16 : index
    %80 = vector.load %arg8[%c0_44, %c16] : memref<8x32xf32, #tpu.memory_space<vmem>>, vector<8x8xf32>
    tpu.vector_store %arg8[%c0_44, %c16], %79 {strides = array<i32>} : memref<8x32xf32, #tpu.memory_space<vmem>>, vector<8x8xf32>,
    %81 = vector.extract_strided_slice %25 {offsets = [0, 24], sizes = [8, 8], strides = [1, 1]} : vector<8x32xf32> to vector<8x8xf32>
    %82 = vector.extract_strided_slice %15 {offsets = [0, 24], sizes = [8, 8], strides = [1, 1]} : vector<8x32xf32> to vector<8x8xf32>
    %83 = vector.extract_strided_slice %23 {offsets = [0, 24], sizes = [8, 8], strides = [1, 1]} : vector<8x32xf32> to vector<8x8xf32>
    "tpu.trace_start"() <{level = 10 : i32, message = "qd,kd->qk"}> : () -> ()
    %cst_45 = arith.constant dense<0.000000e+00> : vector<8x8xf32>
    %84 = tpu.matmul %81, %82, %cst_45 {dimension_numbers = #tpu.dot_dimension_numbers<[1], [1], [0], [0], [0, 0, 1, 0], [], []>} : vector<8x8xf32>, vector<8x8xf32>, vector<8x8xf32> -> vector<8x8xf32>
    "tpu.trace_stop"() : () -> ()
    %85 = arith.addf %84, %32 : vector<8x8xf32>
    %cst_46 = arith.constant dense<0xFF800000> : vector<8xf32>
    %86 = vector.multi_reduction <maximumf>, %85, %cst_46 [1] : vector<8x8xf32> to vector<8xf32>
    %87 = vector.shape_cast %86 : vector<8xf32> to vector<8x1xf32>
    %88 = vector.broadcast %87 : vector<8x1xf32> to vector<8x8xf32>
    %89 = arith.subf %85, %88 : vector<8x8xf32>
    %90 = math.exp %89 : vector<8x8xf32>
    %cst_47 = arith.constant dense<0.000000e+00> : vector<8xf32>
    %91 = vector.multi_reduction <add>, %90, %cst_47 [1] : vector<8x8xf32> to vector<8xf32>
    %92 = vector.shape_cast %91 : vector<8xf32> to vector<8x1xf32>
    %93 = vector.broadcast %92 : vector<8x1xf32> to vector<8x8xf32>
    %94 = arith.divf %90, %93 : vector<8x8xf32>
    %cst_48 = arith.constant dense<0.000000e+00> : vector<8x8xf32>
    %95 = tpu.matmul %94, %83, %cst_48 {dimension_numbers = #tpu.dot_dimension_numbers<[1], [0], [0], [1], [0, 0, 1, 1], [], []>} : vector<8x8xf32>, vector<8x8xf32>, vector<8x8xf32> -> vector<8x8xf32>
    %c0_49 = arith.constant 0 : index
    %c24 = arith.constant 24 : index
    %96 = vector.load %arg8[%c0_49, %c24] : memref<8x32xf32, #tpu.memory_space<vmem>>, vector<8x8xf32>
    tpu.vector_store %arg8[%c0_49, %c24], %95 {strides = array<i32>} : memref<8x32xf32, #tpu.memory_space<vmem>>, vector<8x8xf32>,
    %c0_50 = arith.constant 0 : index
    %c0_51 = arith.constant 0 : index
    %97 = vector.load %arg8[%c0_50, %c0_51] : memref<8x32xf32, #tpu.memory_space<vmem>>, vector<8x32xf32>
    %c3 = arith.constant 3 : index
    %c0_52 = arith.constant 0 : index
    %c0_53 = arith.constant 0 : index
    %98 = vector.load %arg5[%c3, %c0_52, %c0_53] : memref<4x32x32xf32, #tpu.memory_space<vmem>>, vector<1x32x32xf32>
    %99 = vector.shape_cast %98 : vector<1x32x32xf32> to vector<32x32xf32>
    %cst_54 = arith.constant dense<0.000000e+00> : vector<8x32xf32>
    %100 = tpu.matmul %97, %99, %cst_54 {dimension_numbers = #tpu.dot_dimension_numbers<[1], [0], [0], [1], [0, 0, 1, 1], [], []>} : vector<8x32xf32>, vector<32x32xf32>, vector<8x32xf32> -> vector<8x32xf32>
    %c3_55 = arith.constant 3 : index
    %c0_56 = arith.constant 0 : index
    %101 = vector.load %arg6[%c3_55, %c0_56] : memref<4x32xf32, #tpu.memory_space<vmem>>, vector<1x32xf32>
    %102 = vector.broadcast %101 : vector<1x32xf32> to vector<8x32xf32>
    %103 = arith.addf %100, %102 : vector<8x32xf32>
    %c0_57 = arith.constant 0 : index
    %c0_58 = arith.constant 0 : index
    %c0_59 = arith.constant 0 : index
    %104 = vector.load %arg7[%c0_57, %c0_58, %c0_59] : memref<1x8x32xf32, #tpu.memory_space<vmem>>, vector<1x8x32xf32>
    %105 = vector.shape_cast %104 : vector<1x8x32xf32> to vector<8x32xf32>
    %106 = vector.shape_cast %103 : vector<8x32xf32> to vector<1x8x32xf32>
    tpu.vector_store %arg7[%c0_57, %c0_58, %c0_59], %106 {strides = array<i32>} : memref<1x8x32xf32, #tpu.memory_space<vmem>>, vector<1x8x32xf32>,
    return
  }
  func.func @transform_0(%arg0: i32) -> (i32, i32, i32) {
    %c0_i32 = arith.constant 0 : i32
    %c0_i32_0 = arith.constant 0 : i32
    %c0_i32_1 = arith.constant 0 : i32
    return %arg0, %c0_i32, %c0_i32_0 : i32, i32, i32
  }
  func.func @transform_1(%arg0: i32) -> (i32, i32, i32) {
    %c0_i32 = arith.constant 0 : i32
    %c0_i32_0 = arith.constant 0 : i32
    %c0_i32_1 = arith.constant 0 : i32
    return %arg0, %c0_i32, %c0_i32_0 : i32, i32, i32
  }
  func.func @transform_2(%arg0: i32) -> (i32, i32, i32) {
    %c0_i32 = arith.constant 0 : i32
    %c0_i32_0 = arith.constant 0 : i32
    %c0_i32_1 = arith.constant 0 : i32
    return %arg0, %c0_i32, %c0_i32_0 : i32, i32, i32
  }
  func.func @transform_3(%arg0: i32) -> (i32, i32, i32) {
    %c0_i32 = arith.constant 0 : i32
    %c0_i32_0 = arith.constant 0 : i32
    %c0_i32_1 = arith.constant 0 : i32
    return %arg0, %c0_i32, %c0_i32_0 : i32, i32, i32
  }
  func.func @transform_4(%arg0: i32) -> (i32, i32, i32) {
    %c0_i32 = arith.constant 0 : i32
    %c0_i32_0 = arith.constant 0 : i32
    %c0_i32_1 = arith.constant 0 : i32
    %c0_i32_2 = arith.constant 0 : i32
    return %c0_i32, %c0_i32_0, %c0_i32_1 : i32, i32, i32
  }
  func.func @transform_5(%arg0: i32) -> (i32, i32) {
    %c0_i32 = arith.constant 0 : i32
    %c0_i32_0 = arith.constant 0 : i32
    %c0_i32_1 = arith.constant 0 : i32
    return %c0_i32, %c0_i32_0 : i32, i32
  }
  func.func @transform_6(%arg0: i32) -> (i32, i32, i32) {
    %c0_i32 = arith.constant 0 : i32
    %c0_i32_0 = arith.constant 0 : i32
    %c0_i32_1 = arith.constant 0 : i32
    return %arg0, %c0_i32, %c0_i32_0 : i32, i32, i32
  }
}

</mosaic_0001>

<bundles_post_ra>
// kernel: tpu_custom_call.1
= control target key start
LH: loop header
LB: loop body
LE: loop exit
PB: predicated region body
PF: predicated region fallthrough
CT: control target
= control target key end

     0   :  { %s1721_s0 = inlined_call_operand.hbm [shape: f32[2,8,32], index: 0, kind: input, shape index: {}]   ;;  %s1722_s1 = inlined_call_operand.hbm [shape: f32[2,8,32], index: 1, kind: input, shape index: {}]   ;;  %s1723_s2 = inlined_call_operand.hbm [shape: f32[2,8,32], index: 2, kind: input, shape index: {}]   ;;  %s1724_s3 = inlined_call_operand.hbm [shape: s32[2,8,8], index: 3, kind: input, shape index: {}]   ;;  %s1725_s4 = inlined_call_operand.hbm [shape: f32[4,32,32], index: 4, kind: input, shape index: {}]   ;;  %s1726_s5 = inlined_call_operand.vmem [shape: f32[4,32], index: 5, kind: input, shape index: {}]   ;;  %s1727_s6 = inlined_call_operand.hbm [shape: f32[2,8,32], index: 6, kind: output, shape index: {}]  }
   0x1   :  { %1733 = sst [smem:[#allocation21_spill]] %s1722_s1 }
   0x2   :  { %1734 = sst [smem:[#allocation22_spill]] %s1725_s4 }
   0x3   :  { %11 = vsyncpa [#allocation4], 0 }
   0x4   :  { %13 = vsyncpa [#allocation4 + $0x1], 0 }
   0x5   :  { %14 = vsyncpa [#allocation7], 0 }
   0x6   :  { %16 = vsyncpa [#allocation7 + $0x1], 0 }
   0x7   :  { %17 = vsyncpa [#allocation10], 0 }
   0x8   :  { %19 = vsyncpa [#allocation10 + $0x1], 0 }
   0x9   :  { %20 = vsyncpa [#allocation5], 0 }
   0xa   :  { %22 = vsyncpa [#allocation5 + $0x1], 0  ;;  %s1432_s21 = smov 0   ;;  %s1434_s22 = smov 0  }
   0xb   :  { %s1436_s23 = smov 0   ;;  %s1438_s24 = smov 0  }
   0xc LB: > { %1735 = sst [smem:[#allocation18_spill]] %s1381_s23  ;;  %s1453_s25 = sadd.s32 4294967295, %s1385_s24   ;;  %s1385_s24 = sphi %s1438_s24, %s1748_s24   ;;  %s1381_s23 = sphi %s1436_s23, %s1750_s23   ;;  %s1377_s22 = sphi %s1434_s22, %s1752_s22   ;;  %s1373_s21 = sphi %s1432_s21, %s1751_s21  }
   0xd   : > { %s1017_s26 = sadd.s32 4294967294, %s1385_s24   ;;  %p48_p0 = scmp.ne.s32.totalorder %s1377_s22, %s1373_s21 }
   0xe   : > { %p49_p1 = scmp.eq.s32.totalorder %s1453_s25, 0  ;;  %p192_p2 = scmp.eq.s32.totalorder %s1453_s25, 1 }
   0xf   : > { %p198_p3 = scmp.eq.s32.totalorder %s1017_s26, 1  ;;  %p1018_p5 = scmp.ge.s32.totalorder %s1385_s24, 1 }
  0x10   : > { %p1462_p4 = por %p49_p1, %p48_p0  ;;  %p205_p7 = scmp.lt.s32.totalorder %s1385_s24, 3 }
  0x11   : > { %p1467_p6 = por %p198_p3, %p48_p0  ;;  %s1738_s4 = sld [smem:[#allocation22_spill]] }
  0x12   : > { %p1475_p8 = pnand %p1018_p5, %p205_p7  ;;  %s1387_s9 = smov [#allocation11]  }
  0x13   : > { %s218_s10 = sshll.u32 %s1387_s9, 4  ;;  %s1485_s11 = sadd.s32 1, %s1385_s24   ;;  %s219_s10 = int_to_ptr.vmem [resolvable:$true] %s218_s10 }
  0x14   : > { %p1070_p9 = pneg %p1475_p8  ;;  %1740 = sst [smem:[#allocation19_spill]] %s1485_s11 }
  0x15   : > { %s1388_s12 = smov 128   ;;  %s1389_s13 = smov 8  }
  0x16   : > { %p1071_p10 = pnand %p1070_p9, %p49_p1  ;;  %s32_s14 = ssub.s32 %s1385_s24, %s1485_s11 }
  0x17   : > { %s216_s7 = sshll.u32 %s1738_s4, 4  ;;  %s35_s15 = sadd.s32 1, %s1381_s23  ;;  %s217_s7 = int_to_ptr.hbm [resolvable:$true] %s216_s7 }
  0x18   : > { %1073 = dma.hbm_to_vmem [thread:$0]  (!%p1071_p10), %s217_s7, 2048, %s219_s10, [#allocation10], %s1388_s12, %s1388_s12, %s1389_s13  }
  0x19   : > { %p33_p12 = scmp.eq.s32.totalorder %s32_s14, 0  ;;  %p42_p13 = scmp.ne.s32.totalorder %s1381_s23, %s1377_s22 }
  0x1a   : > { %p43_p0 = scmp.eq.s32.totalorder %s1385_s24, 0  ;;  %p1092_p3 = scmp.lt.s32.totalorder %s1385_s24, 2 }
  0x1b   : > { %s1495_s16 = scalar_select %p33_p12, %s1381_s23, %s35_s15  }
  0x1c   : > { %p44_p5 = por %p43_p0, %p42_p13  ;;  %p1499_p7 = por %p192_p2, %p42_p13 }
  0x1d   : > { %1741 = sst [smem:[#allocation20_spill]] %s1495_s16  ;;  %s1728_s18 = sand.u32 1, %s1381_s23  }
  0x1e   : > { %s1505_s19 = sshll.u32 %s1385_s24, 3  ;;  %s1509_s20 = sshll.u32 %s1728_s18, 3 }
  0x1f   : > { %p1511_p9 = pnand %p1092_p3, %p44_p5  ;;  %s1729_s29 = sand.u32 1, %s1385_s24  }
  0x20   : > { %s1744_s1 = sld [smem:[#allocation21_spill]]  ;;  %s258_s10 = scalar_lea.vmem [#allocation6], %s1509_s20 }
  0x21   : > { %s266_s12 = sshll.u32 %s258_s10, 4  ;;  %s1523_s14 = scalar_lea.sflag [#allocation7], %s1729_s29  ;;  %s267_s12 = int_to_ptr.vmem [resolvable:$true] %s266_s12 }
  0x22   : > { %p1191_p10 = pneg %p1511_p9 }
  0x26   : > { %s262_s9 = scalar_lea.hbm %s1744_s1, %s1505_s19  ;;  %s1194_s10 = scalar_lea.hbm %s1744_s1, 16 }
  0x27   : > { %s264_s13 = sshll.u32 %s262_s9, 4  ;;  %s265_s13 = int_to_ptr.hbm [resolvable:$true] %s264_s13 }
  0x28   : > { %s1187_s15 = sshra.s32 %s265_s13, 4  ;;  %s1188_s15 = int_to_ptr.hbm [resolvable:$true] %s1187_s15 }
  0x29   : > { %s1189_s18 = scalar_lea.hbm %s1188_s15, 8  ;;  %p1195_p0 = scmp.lt.s32.totalorder %s1188_s15, %s1744_s1 }
  0x2a   : > { %p1190_p2 = scmp.ne.s32.totalorder %s1188_s15, %s1189_s18  ;;  %p1196_p3 = scmp.lt.s32.totalorder %s1194_s10, %s1189_s18 }
  0x2c   : > { %p1192_p12 = pnand %p1191_p10, %p1190_p2  ;;  %p1197_p5 = por %p1196_p3, %p1195_p0 }
  0x2e   : > { %p1193_p13 = pneg %p1192_p12 }
  0x30   : > { %p1198_p11 = pnand %p1197_p5, %p1193_p13 }
  0x32   : > { %1201 = shalt.err (!%p1198_p11)
}
  0x33   : > { %1080 = dma.hbm_to_vmem [thread:$0]  (!%p1511_p9), %s265_s13, 128, %s267_s12, %s1523_s14  }
  0x34   : > { %s243_s30 = scalar_lea.hbm %s1721_s0, %s1505_s19  ;;  %s239_s7 = scalar_lea.vmem [#allocation3], %s1509_s20 }
  0x35   : > { %s247_s11 = sshll.u32 %s239_s7, 4  ;;  %s245_s4 = sshll.u32 %s243_s30, 4  ;;  %s248_s11 = int_to_ptr.vmem [resolvable:$true] %s247_s11  ;;  %s246_s4 = int_to_ptr.hbm [resolvable:$true] %s245_s4 }
  0x36   : > { %s1745_s18 = sand.u32 1, %s1381_s23   ;;  %s1217_s10 = sshra.s32 %s246_s4, 4  ;;  %s1218_s10 = int_to_ptr.hbm [resolvable:$true] %s1217_s10 }
  0x37   : > { %s236_s15 = scalar_lea.sflag [#allocation4], %s1745_s18  ;;  %s1219_s9 = scalar_lea.hbm %s1218_s10, 8 }
  0x38   : > { %p1220_p11 = scmp.ne.s32.totalorder %s1218_s10, %s1219_s9  ;;  %s1224_s16 = scalar_lea.hbm %s1721_s0, 16 }
  0x39   : > { %p1225_p13 = scmp.lt.s32.totalorder %s1218_s10, %s1721_s0  ;;  %p1226_p0 = scmp.lt.s32.totalorder %s1224_s16, %s1219_s9 }
  0x3a   : > { %p1222_p2 = pnand %p1220_p11, %p1191_p10 }
  0x3b   : > { %p1227_p3 = por %p1226_p0, %p1225_p13 }
  0x3c   : > { %p1223_p12 = pneg %p1222_p2 }
  0x3e   : > { %p1228_p5 = pnand %p1227_p3, %p1223_p12 }
  0x40   : > { %1231 = shalt.err (!%p1228_p5)
}
  0x41   : > { %1077 = dma.hbm_to_vmem [thread:$0]  (!%p1511_p9), %s246_s4, 128, %s248_s11, %s236_s15  }
  0x42   : > { %s281_s18 = scalar_lea.hbm %s1723_s2, %s1505_s19  ;;  %s277_s12 = scalar_lea.vmem [#allocation8], %s1509_s20 }
  0x43   : > { %s285_s13 = sshll.u32 %s277_s12, 4  ;;  %s283_s23 = sshll.u32 %s281_s18, 4  ;;  %s286_s13 = int_to_ptr.vmem [resolvable:$true] %s285_s13  ;;  %s284_s23 = int_to_ptr.hbm [resolvable:$true] %s283_s23 }
  0x44   : > { %s1247_s1 = sshra.s32 %s284_s23, 4  ;;  %s1254_s11 = scalar_lea.hbm %s1723_s2, 16  ;;  %s1248_s1 = int_to_ptr.hbm [resolvable:$true] %s1247_s1 }
  0x45   : > { %s1249_s10 = scalar_lea.hbm %s1248_s1, 8  ;;  %p1255_p13 = scmp.lt.s32.totalorder %s1248_s1, %s1723_s2 }
  0x46   : > { %p1250_p11 = scmp.ne.s32.totalorder %s1248_s1, %s1249_s10  ;;  %p1256_p0 = scmp.lt.s32.totalorder %s1254_s11, %s1249_s10 }
  0x48   : > { %p1252_p2 = pnand %p1250_p11, %p1191_p10  ;;  %p1257_p3 = por %p1256_p0, %p1255_p13 }
  0x4a   : > { %p1253_p12 = pneg %p1252_p2 }
  0x4c   : > { %p1258_p5 = pnand %p1257_p3, %p1253_p12 }
  0x4e   : > { %1261 = shalt.err (!%p1258_p5)
}
  0x4f   : > { %1083 = dma.hbm_to_vmem [thread:$0]  (!%p1511_p9), %s284_s23, 128, %s286_s13, %s1523_s14  }
  0x50   : > { %s300_s7 = scalar_lea.hbm %s1724_s3, %s1505_s19  ;;  %s296_s18 = scalar_lea.vmem [#allocation9], %s1509_s20 }
  0x51   : > { %s304_s12 = sshll.u32 %s296_s18, 4  ;;  %s302_s9 = sshll.u32 %s300_s7, 4  ;;  %s305_s12 = int_to_ptr.vmem [resolvable:$true] %s304_s12  ;;  %s303_s9 = int_to_ptr.hbm [resolvable:$true] %s302_s9 }
  0x52   : > { %s1746_s1 = sand.u32 1, %s1385_s24   ;;  %s1277_s16 = sshra.s32 %s303_s9, 4  ;;  %s1278_s16 = int_to_ptr.hbm [resolvable:$true] %s1277_s16 }
  0x53   : > { %s293_s10 = scalar_lea.sflag [#allocation10], %s1746_s1  ;;  %s1279_s11 = scalar_lea.hbm %s1278_s16, 8 }
  0x54   : > { %p1280_p11 = scmp.ne.s32.totalorder %s1278_s16, %s1279_s11  ;;  %s1284_s13 = scalar_lea.hbm %s1724_s3, 16 }
  0x55   : > { %p1285_p13 = scmp.lt.s32.totalorder %s1278_s16, %s1724_s3  ;;  %p1286_p0 = scmp.lt.s32.totalorder %s1284_s13, %s1279_s11 }
  0x56   : > { %p1282_p2 = pnand %p1280_p11, %p1191_p10 }
  0x57   : > { %p1287_p3 = por %p1286_p0, %p1285_p13 }
  0x58   : > { %p1283_p12 = pneg %p1282_p2 }
  0x5a   : > { %p1288_p5 = pnand %p1287_p3, %p1283_p12 }
  0x5c   : > { %1291 = shalt.err (!%p1288_p5)
}
  0x5d   : > { %1086 = dma.hbm_to_vmem [thread:$0]  (!%p1511_p9), %s303_s9, 128, %s305_s12, %s293_s10  }
  0x5e   : > { %313 = sbr.rel (%p1475_p8) target bundleno = 1159 (0x487), region = 44  ;;  %s1595_s4 = sand.u32 (!%p1475_p8), 1, %s1377_s22  }
  0x5f   : > { %s1598_s15 = sshll.u32 (!%p1475_p8), %s1595_s4, 3  ;;  %s316_s29 = scalar_lea.sflag (!%p1475_p8), [#allocation4], %s1595_s4 }
  0x60   : > { %s319_s30 = scalar_lea.vmem (!%p1475_p8), [#allocation3], %s1598_s15 }
  0x63   : > { %1352 = dma.done.wait (%p1462_p4), %s316_s29, 128  }
  0x64   : > { %1354 = vsyncadd (%p1462_p4), %s316_s29, 4294967168  ;;  %s325_s8 = sand.u32 1, %s1453_s25   ;;  %s329_s7 = scalar_lea.vmem [#allocation6], %s1598_s15 }
  0x65   : > { %s326_s26 = scalar_lea.sflag [#allocation7], %s325_s8 }
  0x66   : > { %1356 = dma.done.wait (%p1462_p4), %s326_s26, 256  }
  0x67   : > { %1358 = vsyncadd (%p1462_p4), %s326_s26, 4294967040  ;;  %s339_s18 = scalar_lea.vmem [#allocation8], %s1598_s15  ;;  %s346_s12 = scalar_lea.sflag [#allocation10], %s325_s8 }
  0x68   : > { %s349_s9 = scalar_lea.vmem [#allocation9], %s1598_s15 }
  0x69   : > { %1360 = dma.done.wait (%p1462_p4), %s346_s12, 128  }
  0x6a   : > { %1362 = vsyncadd (%p1462_p4), %s346_s12, 4294967168 }
  0x6b   : > { %1364 = dma.done.wait (%p49_p1), [#allocation10], 2048  }
  0x6c   : > { %1366 = vsyncadd (%p49_p1), [#allocation10], 4294965248  ;;  %v435_v0 = vld [vmem:[#allocation11 + $0x38] sm:$0xff]  ;;  %v434_v2 = vld [vmem:[#allocation11 + $0x30] sm:$0xff]  ;;  %vm406_vm0 = vcmask 261120   ;;  %vm496_vm1 = vcmask 64512  }
  0x6d   : > { %v403_v1 = vld [vmem:[#allocation11 + $0x18] sm:$0xff]  ;;  %453 = vmatpush.msra.mxu1 %v435_v0  ;;  %v402_v3 = vld [vmem:[#allocation11 + $0x10] sm:$0xff]  ;;  %v433_v4 = vld [vmem:[#allocation11 + $0x28] sm:$0xff]  ;;  %s1390_s11 = smov 104   ;;  %s1391_s23 = smov 120   ;;  %v1393_v29 = vmov 0.0  }
  0x6e   : > { %422 = vmatpush.msra.mxu0 %v403_v1  ;;  %v401_v5 = vld [vmem:[#allocation11 + $0x8] sm:$0xff]  ;;  %v432_v6 = vld [vmem:[#allocation11 + $0x20] sm:$0xff]  ;;  %v430_v8 = vld [vmem:[%s329_s7] sm:$0xff]  ;;  %s1392_s14 = smov 112   ;;  %s1394_s20 = smov 8  }
  0x6f   : > { %454 = vmatpush.msra.mxu1 %v434_v2  ;;  %v400_v7 = vld [vmem:[#allocation11] sm:$0xff]  ;;  %v1137_v10 = vld [vmem:[%s1726_s5 + $0x1] ss:$0 sm:$0xff]  ;;  %v1138_v11 = vld [vmem:[%s1726_s5] ss:$0 sm:$0xff]  ;;  %s1395_s29 = smov 16  }
  0x70   : > { %423 = vmatpush.msra.mxu0 %v402_v3  ;;  %v399_v9 = vld [vmem:[%s319_s30] sm:$0xff]  ;;  %v466_v17 = vld [vmem:[#allocation11 + $0x58] sm:$0xff]  ;;  %v465_v18 = vld [vmem:[#allocation11 + $0x50] sm:$0xff]  ;;  %s1396_s30 = smov 24   ;;  %s1053_s8 = sshll.u32 %s1453_s25, 3 }
  0x71   : > { %455 = vmatpush.msra.mxu1 %v433_v4  ;;  %484 = vmatpush.msra.mxu2 %v466_v17  ;;  %v464_v19 = vld [vmem:[#allocation11 + $0x48] sm:$0xff]  ;;  %v463_v20 = vld [vmem:[#allocation11 + $0x40] sm:$0xff]  ;;  %v493_v27 = vld [vmem:[%s349_s9] sm:$0xff]  ;;  %s398_s27 = scalar_lea.vmem [#allocation12], %s1598_s15  ;;  %s857_s16 = scalar_lea.sflag [#allocation5], %s1595_s4 }
  0x72   : > { %424 = vmatpush.msra.mxu0 %v401_v5  ;;  %v461_v21 = vld [vmem:[%s339_s18] sm:$0xff]  ;;  %vm494_vm2 = vcmp.eq.s32.totalorder %v493_v27, 0  ;;  %v1139_v34 = vld [vmem:[%s1726_s5 + $0x2] ss:$0 sm:$0xff]  ;;  %s867_s18 = scalar_lea.hbm %s1727_s6, %s1053_s8  ;;  %s869_s1 = sshll.u32 %s398_s27, 4  ;;  %s870_s1 = int_to_ptr.vmem [resolvable:$true] %s869_s1 }
  0x73   : > { %456 = vmatpush.msra.mxu1 %v432_v6  ;;  %485 = vmatpush.msra.mxu2 %v465_v18  ;;  %v495_v30 = vsel %vm494_vm2, -1e+09, %v1393_v29  ;;  %s871_s10 = sshll.u32 %s867_s18, 4  ;;  %s1327_s15 = scalar_lea.hbm %s1727_s6, 16  ;;  %s872_s10 = int_to_ptr.hbm [resolvable:$true] %s871_s10 }
  0x74   : > { %425 = vmatpush.msra.mxu0 %v400_v7  ;;  %1037 = vmatmul.msk.f32.vlgmr.msra.gmra.mxu1 %vm406_vm0, %v430_v8  ;;  %s1321_s25 = sshra.s32 %s872_s10, 4  ;;  %s1322_s25 = int_to_ptr.hbm [resolvable:$true] %s1321_s25 }
  0x75   : > { %1036 = vmatmul.msk.f32.vlgmr.msra.gmra.mxu0 %vm406_vm0, %v399_v9  ;;  %486 = vmatpush.msra.mxu2 %v464_v19  ;;  %p1328_p9 = scmp.lt.s32.totalorder %s1322_s25, %s1727_s6 }
  0x77   : > { %487 = vmatpush.msra.mxu2 %v463_v20 }
  0x78   : > { %1038 = vmatmul.msk.f32.vlgmr.msra.gmra.mxu2 %vm406_vm0, %v461_v21 }
  0xf1   : > { %v458_v12 = vpop.f32.mrf.mxu1 }
  0xf2   : > { %v427_v13 = vpop.f32.mrf.mxu0  ;;  %v459_v14 = vadd.f32 %v1137_v10, %v458_v12 }
  0xf3   : > { %v428_v15 = vadd.f32 %v1138_v11, %v427_v13 }
  0xf4   : > { %742 = vrot.lane.b32.xlu2 %v459_v14, %s1390_s11  ;;  %573 = vrot.lane.b32.xlu1 %v459_v14, %s1391_s23 }
  0xf5   : > { %v492_v16 = vmul.f32 0.35355338, %v428_v15  ;;  %658 = vrot.lane.b32.xlu0 %v459_v14, %s1392_s14  ;;  %1039 = vmatpush.xpose.msk.msra.mxu3 %vm496_vm1, %v459_v14 }
  0xf8   : > { %1040 = vmatmul.msk.f32.vlgmr.msra.gmra.mxu3 %vm496_vm1, %v492_v16 }
  0xfb   : > { %v489_v35 = vpop.f32.mrf.mxu2 }
  0xfc   : > { %740 = vrot.lane.b32.xlu2 %v492_v16, %s1390_s11  ;;  %571 = vrot.lane.b32.xlu1 %v492_v16, %s1391_s23  ;;  %v490_v36 = vadd.f32 %v1139_v34, %v489_v35 }
  0xfd   : > { %656 = vrot.lane.b32.xlu0 %v492_v16, %s1392_s14 }
  0xfe   : > { %565 = vmatpush.msrb.mxu3 %v490_v36 }
 0x14e   : > { %v743_v23 = vpop.permute.xlu2 %742 }
 0x156   : > { %v741_v28 = vpop.permute.xlu2 %740 }
 0x166   : > { %v574_v22 = vpop.permute.xlu1 %573 }
 0x167   : > { %v659_v24 = vpop.permute.xlu0 %658  ;;  %1042 = vmatpush.xpose.msk.msrb.mxu0 %vm496_vm1, %v574_v22 }
 0x168   : > { %1045 = vmatpush.xpose.msk.msrb.mxu2 %vm496_vm1, %v659_v24 }
 0x16b   : > { %1048 = vmatpush.xpose.msk.msra.mxu0 %vm496_vm1, %v743_v23 }
 0x16e   : > { %v572_v25 = vpop.permute.xlu1 %571 }
 0x16f   : > { %v657_v26 = vpop.permute.xlu0 %656  ;;  %1043 = vmatmul.msk.f32.vlgmr.msrb.gmra.mxu0 %vm496_vm1, %v572_v25 }
 0x170   : > { %1046 = vmatmul.msk.f32.vlgmr.msrb.gmra.mxu2 %vm496_vm1, %v657_v26 }
 0x177   : > { %1049 = vmatmul.msk.f32.vlgmr.msra.gmra.mxu0 %vm496_vm1, %v741_v28 }
 0x17b   : > { %v520_v31 = vpop.f32.mrf.mxu3 }
 0x17c   : > { %v521_v32 = vadd.f32 %v520_v31, %v495_v30 }
 0x17e   : > { %v523_v33 = vsel %vm496_vm1, %v521_v32, -inf }
 0x17f   : > { %524 = vmax.xlane.f32.xlu0 %v523_v33 }
 0x1ec   : > { %v596_v37 = vpop.f32.mrf.mxu0 }
 0x1ed   : > { %v597_v38 = vadd.f32 %v596_v37, %v495_v30 }
 0x1ef   : > { %v599_v39 = vsel %vm496_vm1, %v597_v38, -inf }
 0x1f0   : > { %600 = vmax.xlane.f32.xlu1 %v599_v39 }
 0x1f2   : > { %v525_v40 = vpop.xlane.xlu0 %524 }
 0x1f3   : > { %v526_v41 = vsub.f32 %v521_v32, %v525_v40  ;;  %v681_v42 = vpop.f32.mrf.mxu2 }
 0x1f4   : > { %v682_v43 = vadd.f32 %v681_v42, %v495_v30  ;;  %v765_v46 = vpop.f32.mrf.mxu0 }
 0x1f5   : > { %v527_v44 = vmul.f32 1.442695, %v526_v41  ;;  %v766_v47 = vadd.f32 %v765_v46, %v495_v30 }
 0x1f6   : > { %v684_v45 = vsel %vm496_vm1, %v682_v43, -inf }
 0x1f7   : > { %1141 = vpow2.f32 %v527_v44  ;;  %685 = vmax.xlane.f32.xlu2 %v684_v45  ;;  %v768_v49 = vsel %vm496_vm1, %v766_v47, -inf }
 0x1fd   : > { %v1142_v48 = vpop.eup %1141 }
 0x1fe   : > { %v529_v50 = vsel %vm496_vm1, %v1142_v48, 0.0 }
 0x1ff   : > { %769 = vmax.xlane.f32.xlu2 %v768_v49  ;;  %530 = vadd.xlane.f32.xlu0 %v529_v50 }
 0x263   : > { %v601_v51 = vpop.xlane.xlu1 %600 }
 0x264   : > { %v602_v52 = vsub.f32 %v597_v38, %v601_v51 }
 0x266   : > { %v603_v53 = vmul.f32 1.442695, %v602_v52 }
 0x268   : > { %1143 = vpow2.f32 %v603_v53 }
 0x26a   : > { %v686_v54 = vpop.xlane.xlu2 %685 }
 0x26b   : > { %v687_v55 = vsub.f32 %v682_v43, %v686_v54 }
 0x26d   : > { %v688_v56 = vmul.f32 1.442695, %v687_v55 }
 0x26e   : > { %v1659_v57 = vpop.eup %1143 }
 0x26f   : > { %1145 = vpow2.f32 %v688_v56  ;;  %v605_v58 = vsel %vm496_vm1, %v1659_v57, 0.0 }
 0x270   : > { %606 = vadd.xlane.f32.xlu1 %v605_v58  ;;  %v828_v58 = vld [vmem:[#allocation11 + $0x70] sm:$0xff] }
 0x272   : > { %v770_v59 = vpop.xlane.xlu2 %769  ;;  %v531_v60 = vpop.xlane.xlu0 %530 }
 0x273   : > { %v771_v61 = vsub.f32 %v766_v47, %v770_v59  ;;  %1147 = vrcp.f32 %v531_v60  ;;  %v543_v5 = vand.u32 2147483648, %v531_v60  ;;  %v541_v7 = vand.u32 2147483647, %v531_v60  ;;  %v827_v59 = vld [vmem:[#allocation11 + $0x68] sm:$0xff] }
 0x274   : > { %vm537_vm4 = vweird.f32 %v531_v60 }
 0x275   : > { %v1663_v62 = vpop.eup %1145  ;;  %v772_v63 = vmul.f32 1.442695, %v771_v61  ;;  %v544_v10 = vor.u32 1.1754944e-38, %v543_v5  ;;  %vm542_vm6 = vcmp.eq.f32.partialorder %v541_v7, 8.507059e+37 }
 0x276   : > { %v690_v0 = vsel %vm496_vm1, %v1663_v62, 0.0 }
 0x277   : > { %1149 = vpow2.f32 %v772_v63  ;;  %691 = vadd.xlane.f32.xlu2 %v690_v0 }
 0x279   : > { %v1148_v1 = vpop.eup %1147 }
 0x27a   : > { %v533_v2 = vmul.f32 %v1148_v1, %v531_v60  ;;  %vm538_vm3 = vweird.f32 %v1148_v1  ;;  %v826_v60 = vld [vmem:[#allocation11 + $0x60] sm:$0xff] }
 0x27b   : > { %vm539_vm5 = vmor %vm537_vm4, %vm538_vm3 }
 0x27c   : > { %v534_v3 = vsub.f32 1.0, %v533_v2 }
 0x27d   : > { %v1667_v4 = vpop.eup %1149 }
 0x27e   : > { %v535_v6 = vmul.f32 %v1148_v1, %v534_v3  ;;  %v774_v8 = vsel %vm496_vm1, %v1667_v4, 0.0 }
 0x27f   : > { %775 = vadd.xlane.f32.xlu0 %v774_v8 }
 0x280   : > { %v536_v9 = vadd.f32 %v1148_v1, %v535_v6 }
 0x282   : > { %v540_v11 = vsel %vm539_vm5, %v1148_v1, %v536_v9  ;;  %vm738_vm5 = vcmask 195712   ;;  %v1140_v1 = vld [vmem:[%s1726_s5 + $0x3] ss:$0 sm:$0xff] }
 0x283   : > { %v545_v12 = vsel %vm542_vm6, %v544_v10, %v540_v11  ;;  %vm822_vm6 = vcmask 261312  }
 0x284   : > { %v546_v13 = vmul.f32 %v1142_v48, %v545_v12 }
 0x286   : > { %1041 = vmatmul.msk.f32.vlgmr.msrb.gmra.mxu3 %vm496_vm1, %v546_v13 }
 0x289   : > { %624 = vrot.lane.b32.xlu1 %v490_v36, %s1391_s23 }
 0x28f   : > { %708 = vrot.lane.b32.xlu2 %v490_v36, %s1392_s14 }
 0x293   : > { %792 = vrot.lane.b32.xlu0 %v490_v36, %s1390_s11  ;;  %s1323_s11 = scalar_lea.hbm %s1322_s25, 8 }
 0x294   : > { %p1324_p1 = scmp.ne.s32.totalorder %s1322_s25, %s1323_s11  ;;  %p1329_p10 = scmp.lt.s32.totalorder %s1327_s15, %s1323_s11 }
 0x296   : > { %p1325_p4 = pnand %p1324_p1, %p1499_p7  ;;  %p1330_p11 = por %p1329_p10, %p1328_p9 }
 0x298   : > { %p1326_p8 = pneg %p1325_p4 }
 0x29a   : > { %p1331_p2 = pnand %p1330_p11, %p1326_p8 }
 0x2e3   : > { %v607_v14 = vpop.xlane.xlu1 %606 }
 0x2e4   : > { %1151 = vrcp.f32 %v607_v14  ;;  %v619_v22 = vand.u32 2147483648, %v607_v14  ;;  %vm613_vm8 = vweird.f32 %v607_v14  ;;  %v617_v26 = vand.u32 2147483647, %v607_v14 }
 0x2e6   : > { %v620_v30 = vor.u32 1.1754944e-38, %v619_v22  ;;  %vm618_vm11 = vcmp.eq.f32.partialorder %v617_v26, 8.507059e+37 }
 0x2ea   : > { %v1152_v15 = vpop.eup %1151  ;;  %v692_v16 = vpop.xlane.xlu2 %691 }
 0x2eb   : > { %v609_v17 = vmul.f32 %v1152_v15, %v607_v14  ;;  %1153 = vrcp.f32 %v692_v16  ;;  %vm614_vm7 = vweird.f32 %v1152_v15  ;;  %v704_v28 = vand.u32 2147483648, %v692_v16 }
 0x2ec   : > { %vm615_vm9 = vmor %vm613_vm8, %vm614_vm7  ;;  %v702_v32 = vand.u32 2147483647, %v692_v16  ;;  %vm698_vm12 = vweird.f32 %v692_v16 }
 0x2ed   : > { %v610_v18 = vsub.f32 1.0, %v609_v17  ;;  %v705_v36 = vor.u32 1.1754944e-38, %v704_v28 }
 0x2ee   : > { %vm703_vm14 = vcmp.eq.f32.partialorder %v702_v32, 8.507059e+37 }
 0x2ef   : > { %v611_v19 = vmul.f32 %v1152_v15, %v610_v18 }
 0x2f1   : > { %v1154_v20 = vpop.eup %1153  ;;  %v612_v21 = vadd.f32 %v1152_v15, %v611_v19 }
 0x2f2   : > { %v694_v23 = vmul.f32 %v1154_v20, %v692_v16  ;;  %v709_v24 = vpop.permute.xlu2 %708  ;;  %v776_v25 = vpop.xlane.xlu0 %775  ;;  %vm699_vm10 = vweird.f32 %v1154_v20 }
 0x2f3   : > { %1155 = vrcp.f32 %v776_v25  ;;  %729 = vmatpush.msra.mxu3 %v709_v24  ;;  %v616_v29 = vsel %vm615_vm9, %v1152_v15, %v612_v21  ;;  %vm700_vm13 = vmor %vm698_vm12, %vm699_vm10  ;;  %v788_v44 = vand.u32 2147483648, %v776_v25  ;;  %v786_v46 = vand.u32 2147483647, %v776_v25 }
 0x2f4   : > { %v695_v27 = vsub.f32 1.0, %v694_v23  ;;  %v621_v34 = vsel %vm618_vm11, %v620_v30, %v616_v29  ;;  %vm782_vm2 = vweird.f32 %v776_v25 }
 0x2f5   : > { %v622_v41 = vmul.f32 %v1659_v57, %v621_v34  ;;  %v789_v48 = vor.u32 1.1754944e-38, %v788_v44  ;;  %vm787_vm4 = vcmp.eq.f32.partialorder %v786_v46, 8.507059e+37  ;;  %v829_v57 = vld [vmem:[#allocation11 + $0x78] sm:$0xff] }
 0x2f6   : > { %v696_v31 = vmul.f32 %v1154_v20, %v695_v27  ;;  %847 = vmatpush.msra.mxu2 %v829_v57 }
 0x2f8   : > { %v697_v33 = vadd.f32 %v1154_v20, %v696_v31  ;;  %848 = vmatpush.msra.mxu2 %v828_v58 }
 0x2f9   : > { %v1156_v35 = vpop.eup %1155 }
 0x2fa   : > { %v701_v37 = vsel %vm700_vm13, %v1154_v20, %v697_v33  ;;  %v778_v38 = vmul.f32 %v1156_v35, %v776_v25  ;;  %vm783_vm15 = vweird.f32 %v1156_v35  ;;  %849 = vmatpush.msra.mxu2 %v827_v59 }
 0x2fb   : > { %v706_v39 = vsel %vm703_vm14, %v705_v36, %v701_v37  ;;  %v625_v40 = vpop.permute.xlu1 %624  ;;  %vm784_vm3 = vmor %vm782_vm2, %vm783_vm15 }
 0x2fc   : > { %v779_v42 = vsub.f32 1.0, %v778_v38  ;;  %645 = vmatpush.msrb.mxu1 %v625_v40  ;;  %v707_v43 = vmul.f32 %v1663_v62, %v706_v39  ;;  %850 = vmatpush.msra.mxu2 %v826_v60 }
 0x2fd   : > { %1044 = vmatmul.msk.f32.vlgmr.msrb.gmra.mxu1 %vm496_vm1, %v622_v41 }
 0x2fe   : > { %v780_v45 = vmul.f32 %v1156_v35, %v779_v42  ;;  %1047 = vmatmul.msk.f32.vlgmr.msra.gmra.mxu3 %vm496_vm1, %v707_v43 }
 0x300   : > { %v781_v47 = vadd.f32 %v1156_v35, %v780_v45 }
 0x302   : > { %v785_v49 = vsel %vm784_vm3, %v1156_v35, %v781_v47 }
 0x303   : > { %v790_v50 = vsel %vm787_vm4, %v789_v48, %v785_v49 }
 0x304   : > { %v791_v51 = vmul.f32 %v1667_v4, %v790_v50 }
 0x305   : > { %v793_v52 = vpop.permute.xlu0 %792 }
 0x306   : > { %813 = vmatpush.msra.mxu1 %v793_v52 }
 0x307   : > { %1050 = vmatmul.msk.f32.vlgmr.msra.gmra.mxu1 %vm496_vm1, %v791_v51 }
 0x309   : > { %v567_v53 = vpop.f32.mrf.mxu3 }
 0x30a   : > { %570 = vst.msk [vmem:[#allocation2] sm:$0xff] %vm496_vm1, %v567_v53  ;;  %vm654_vm1 = vcmask 130112  }
 0x37a   : > { %v647_v54 = vpop.f32.mrf.mxu1 }
 0x37b   : > { %651 = vrot.lane.b32.xlu1 %v647_v54, %s1394_s20 }
 0x381   : > { %v731_v55 = vpop.f32.mrf.mxu3 }
 0x382   : > { %735 = vrot.lane.b32.xlu0 %v731_v55, %s1395_s29 }
 0x384   : > { %v815_v56 = vpop.f32.mrf.mxu1 }
 0x385   : > { %819 = vrot.lane.b32.xlu2 %v815_v56, %s1396_s30 }
 0x3df   : > { %v820_v63 = vpop.permute.xlu2 %819 }
 0x3ed   : > { %v652_v61 = vpop.permute.xlu1 %651 }
 0x3ee   : > { %655 = vst.msk [vmem:[#allocation2] sm:$0xff] %vm654_vm1, %v652_v61 }
 0x3f4   : > { %v736_v62 = vpop.permute.xlu0 %735 }
 0x3f5   : > { %739 = vst.msk [vmem:[#allocation2] sm:$0xff] %vm738_vm5, %v736_v62 }
 0x3f6   : > { %823 = vst.msk [vmem:[#allocation2] sm:$0xff] %vm822_vm6, %v820_v63 }
 0x3fd   : > { %v824_v0 = vld [vmem:[#allocation2] sm:$0xff] }
 0x3fe   : > { %1051 = vmatmul.msk.f32.vlgmr.msra.gmra.mxu2 %vm406_vm0, %v824_v0 }
 0x481   : > { %v852_v2 = vpop.f32.mrf.mxu2 }
 0x482   : > { %v853_v3 = vadd.f32 %v1140_v1, %v852_v2 }
 0x484   : > { %855 = vst.msk [vmem:[%s398_s27] sm:$0xff] %vm406_vm0, %v853_v3 }
 0x485   : > { %1334 = shalt.err (!%p1331_p2)
}
 0x486   : > { %1068 = dma.vmem_to_hbm [thread:$0]  (%p1499_p7), %s870_s1, 128, %s872_s10, %s857_s16  }
 0x487 PF: > { %s883_s4 = sand.u32 1, %s1373_s21   ;;  %p1747_p12 = scmp.ge.s32.totalorder %s1385_s24, 2 }
 0x488   : > { %s884_s20 = scalar_lea.sflag [#allocation5], %s883_s4 }
 0x489   : > { %p1088_p13 = pnand %p1747_p12, %p1467_p6 }
 0x48b   : > { %p1089_p0 = pneg %p1088_p13 }
 0x48d   : > { %1368 = dma.done.wait (%p1089_p0), %s884_s20, 128  }
 0x48e   : > { %1370 = vsyncadd (%p1089_p0), %s884_s20, 4294967168  ;;  %s1748_s24 = sld [smem:[#allocation19_spill]]  ;;  %s1751_s21 = smov %s1377_s22 }
 0x48f   : > { %s1749_s29 = sld [smem:[#allocation18_spill]] }
 0x490   : > { %s1750_s23 = sld [smem:[#allocation20_spill]] }
 0x494   : > { %p25_p3 = scmp.ge.s32.totalorder %s1748_s24, 4  }
 0x495   : > { %s1752_s22 = smov %s1749_s29 }
 0x496   :  { %27 = sbr.rel (!%p25_p3) target bundleno = 12 (0xc), region = 133 }
 0x49b   :  { %890 = vsyncpa [#allocation4], 1 }
 0x49c   :  { %892 = vsyncpa [#allocation4 + $0x1], 1 }
 0x49d   :  { %893 = vsyncpa [#allocation7], 1 }
 0x49e   :  { %895 = vsyncpa [#allocation7 + $0x1], 1 }
 0x49f   :  { %896 = vsyncpa [#allocation10], 1 }
 0x4a0   :  { %898 = vsyncpa [#allocation10 + $0x1], 1 }
 0x4a1   :  { %899 = vsyncpa [#allocation5], 1 }
 0x4a2   :  { %901 = vsyncpa [#allocation5 + $0x1], 1 }

</bundles_post_ra>
